<compile_context>
chip_gen: v6e
topology: v6e:2x2x1
jax: 0.10.0
libtpu: 0.0.40
codegen_flags: <defaults>
</compile_context>

<pallas_src>
import jax
import jax.numpy as jnp
from jax.experimental import pallas as pl
from jax.experimental.pallas import tpu as pltpu

EMB_DIM = 300          # embedding_dim=300
D_PAD = 384            # 300 padded to a multiple of 128 (MXU-friendly K)
HIDDEN = 256           # self.hidden = Linear(300, 256)
NUM_LABELS = 17        # len(itos_labels) -- synthetic UPOS-ish tag set
NL_PAD = 128           # 17 padded to 128 lanes (lane-dense output store)
VOCAB = 503            # scaled-down stand-in for vocab_size + 3
NEG_BIG = -1e30        # bias for padded label columns -> exp() underflows to 0
MAX_TB = 1024          # max batch rows per grid step (<4 MiB VMEM footprint)


def _round16(x):
    return ((x + 15) // 16) * 16


def cbow_tagger_kernel(rep_ref, w1_ref, b1_ref, w2_ref, b2_ref, logp_ref):
    # rep_ref:  (TB, D_PAD)   bf16  -- mean of [surround..., center] embeddings
    # w1_ref:   (D_PAD, H)    bf16   b1_ref: (1, H)      f32
    # w2_ref:   (H, NL_PAD)   bf16   b2_ref: (1, NL_PAD) f32 (pad cols = -1e30)
    # logp_ref: (TB, NL_PAD)  f32
    # convolved = tanh(self.hidden(rep))        -- MXU (bf16 in, f32 acc)
    h = jnp.tanh(jnp.dot(rep_ref[...], w1_ref[...],
                         preferred_element_type=jnp.float32) + b1_ref[...])
    # predicted = self.output(convolved)
    logits = jnp.dot(h.astype(jnp.bfloat16), w2_ref[...],
                     preferred_element_type=jnp.float32) + b2_ref[...]
    # numerically-stable log-softmax; single exp per tile, exp(z) reused
    m = jnp.max(logits, axis=-1, keepdims=True)
    z = logits - m
    p = jnp.exp(z)                                   # pad cols underflow to 0
    sumexp = jnp.sum(p, axis=-1, keepdims=True)
    logp_ref[...] = z - jnp.log(sumexp)              # for CE loss + softmax


def forward(surround_ids, center_ids, targets, params):
    """Gather + window mean in plain JAX; MLP + log-softmax in the kernel."""
    # self.words_embeddings_surround / _center lookups
    emb_sur = params["emb_surround"][surround_ids]          # (B, L, D_PAD) bf16
    emb_cen = params["emb_center"][center_ids]              # (B, D_PAD)    bf16
    L = surround_ids.shape[1]
    # torch.cat([surrounds, center.unsqueeze(1)], dim=1).mean(dim=1)
    # (divisor L+1 because the center row is included in the window)
    rep = (jnp.sum(emb_sur.astype(jnp.float32), axis=1)
           + emb_cen.astype(jnp.float32)) * (1.0 / (L + 1))   # (B, D_PAD) f32
    # TODO(synk): nn.Dropout(0.2) on the embedded window is skipped
    # (deterministic inference path, train=False).
    rep = rep.astype(jnp.bfloat16)                           # MXU operand dtype

    B = rep.shape[0]
    b16 = _round16(B)
    if b16 <= 256:
        # small batch: single grid step (launch-overhead bound regardless)
        tb = b16
    else:
        # >= 2 grid steps so v7x's two TensorCores both get work; tile capped
        # at MAX_TB (tile sweeps show ~85% of HBM roofline at 512-1024 rows)
        tb = min(MAX_TB, _round16(pl.cdiv(b16, 2)))
    b_pad = pl.cdiv(b16, tb) * tb
    if b_pad != B:
        rep = jnp.pad(rep, ((0, b_pad - B), (0, 0)))

    logp_pad = pl.pallas_call(
        cbow_tagger_kernel,
        out_shape=jax.ShapeDtypeStruct((b_pad, NL_PAD), jnp.float32),
        grid=(b_pad // tb,),
        in_specs=[
            pl.BlockSpec((tb, D_PAD), lambda i: (i, 0)),          # rep (tiled B)
            # constant index_map -> weights stay VMEM-resident across steps
            pl.BlockSpec((D_PAD, HIDDEN), lambda i: (0, 0)),      # w1
            pl.BlockSpec((1, HIDDEN), lambda i: (0, 0)),          # b1
            pl.BlockSpec((HIDDEN, NL_PAD), lambda i: (0, 0)),     # w2
            pl.BlockSpec((1, NL_PAD), lambda i: (0, 0)),          # b2
        ],
        out_specs=pl.BlockSpec((tb, NL_PAD), lambda i: (i, 0)),
        compiler_params=pltpu.CompilerParams(
            dimension_semantics=("parallel",)),                   # megacore on v7x
    )(rep, params["w1"], params["b1"], params["w2"], params["b2"])

    logp = logp_pad[:B, :NUM_LABELS]
    # torch.softmax(predicted, dim=1) -- cheap wrapper-side exp on 17 columns
    probs = jnp.exp(logp)
    # CrossEntropyLoss(reduction='none'): per-example NLL of the target class
    per_example_loss = -jnp.take_along_axis(logp, targets[:, None], axis=1)[:, 0]
    prediction = jnp.argmax(logp, axis=1)
    accuracy = jnp.mean((prediction == targets).astype(jnp.float32))
    # mirrors: return (loss.sum(), batchSize, accuracy)  /  probs if getPredictions
    return per_example_loss.sum(), B, accuracy, probs


def init_params(key):
    k1, k2, k3, k4 = jax.random.split(key, 4)
    # nn.Embedding default init ~ N(0, 1); nn.Linear ~ U(-1/sqrt(fan_in), +)
    emb_c = jnp.zeros((VOCAB, D_PAD), jnp.float32).at[:, :EMB_DIM].set(
        jax.random.normal(k1, (VOCAB, EMB_DIM), jnp.float32))
    emb_s = jnp.zeros((VOCAB, D_PAD), jnp.float32).at[:, :EMB_DIM].set(
        jax.random.normal(k2, (VOCAB, EMB_DIM), jnp.float32))
    lim1 = 1.0 / (EMB_DIM ** 0.5)
    lim2 = 1.0 / (HIDDEN ** 0.5)
    w1 = jnp.zeros((D_PAD, HIDDEN), jnp.float32).at[:EMB_DIM, :].set(
        jax.random.uniform(k3, (EMB_DIM, HIDDEN), jnp.float32, -lim1, lim1))
    b1 = jnp.zeros((1, HIDDEN), jnp.float32)
    w2 = jnp.zeros((HIDDEN, NL_PAD), jnp.float32).at[:, :NUM_LABELS].set(
        jax.random.uniform(k4, (HIDDEN, NUM_LABELS), jnp.float32, -lim2, lim2))
    # Padded label columns get a huge negative bias (f32) so softmax ignores
    # them; the pad columns are sliced off before any downstream math.
    b2 = jnp.full((1, NL_PAD), NEG_BIG, jnp.float32).at[:, :NUM_LABELS].set(0.0)
    return {"emb_center": emb_c.astype(jnp.bfloat16),
            "emb_surround": emb_s.astype(jnp.bfloat16),
            "w1": w1.astype(jnp.bfloat16), "b1": b1,
            "w2": w2.astype(jnp.bfloat16), "b2": b2}


if __name__ == "__main__":
    key = jax.random.PRNGKey(0)
    kp, ks, kc, kt = jax.random.split(key, 4)

    B, L = 32, 6  # batchSize=32 in the original script, 6 surround words each
    params = init_params(kp)
    surround_ids = jax.random.randint(ks, (B, L), 0, VOCAB, dtype=jnp.int32)
    center_ids = jax.random.randint(kc, (B,), 0, VOCAB, dtype=jnp.int32)
    targets = jax.random.randint(kt, (B,), 0, NUM_LABELS, dtype=jnp.int32)

    loss_sum, batch_size, accuracy, probs = jax.jit(forward)(
        surround_ids, center_ids, targets, params)
    jax.block_until_ready((loss_sum, accuracy, probs))

    # sanity: probs rows must sum to 1 and the loss must be finite
    assert bool(jnp.allclose(jnp.sum(probs, axis=1), 1.0, atol=1e-4))
    assert bool(jnp.isfinite(loss_sum))
    print("KERNEL_OK")
</pallas_src>

<mosaic_0001>
module attributes {stable_mosaic.version = 11 : i64} {
  func.func @cbow_tagger_kernel(%arg0: i32, %arg1: memref<32x384xbf16, #tpu.memory_space<vmem>>, %arg2: memref<384x256xbf16, #tpu.memory_space<vmem>>, %arg3: memref<1x256xf32, #tpu.memory_space<vmem>>, %arg4: memref<256x128xbf16, #tpu.memory_space<vmem>>, %arg5: memref<1x128xf32, #tpu.memory_space<vmem>>, %arg6: memref<32x128xf32, #tpu.memory_space<vmem>>) attributes {dimension_semantics = [#tpu.dimension_semantics<parallel>], iteration_bounds = array<i64: 1>, scalar_prefetch = 0 : i64, scratch_operands = 0 : i64, tpu.core_type = #tpu.core_type<tc>, window_params = [{transform_indices = @transform_0, window_bounds = array<i64: 32, 384>}, {pipeline_mode = #tpu.pipeline_mode<synchronous>, transform_indices = @transform_1, window_bounds = array<i64: 384, 256>}, {pipeline_mode = #tpu.pipeline_mode<synchronous>, transform_indices = @transform_2, window_bounds = array<i64: 1, 256>}, {pipeline_mode = #tpu.pipeline_mode<synchronous>, transform_indices = @transform_3, window_bounds = array<i64: 256, 128>}, {pipeline_mode = #tpu.pipeline_mode<synchronous>, transform_indices = @transform_4, window_bounds = array<i64: 1, 128>}, {transform_indices = @transform_5, window_bounds = array<i64: 32, 128>}]} {
    %c0 = arith.constant 0 : index
    %c0_0 = arith.constant 0 : index
    %0 = vector.load %arg1[%c0, %c0_0] : memref<32x384xbf16, #tpu.memory_space<vmem>>, vector<32x384xbf16>
    %c0_1 = arith.constant 0 : index
    %c0_2 = arith.constant 0 : index
    %1 = vector.load %arg2[%c0_1, %c0_2] : memref<384x256xbf16, #tpu.memory_space<vmem>>, vector<384x256xbf16>
    %cst = arith.constant dense<0.000000e+00> : vector<32x256xf32>
    %2 = tpu.matmul %0, %1, %cst {dimension_numbers = #tpu.dot_dimension_numbers<[1], [0], [0], [1], [0, 0, 1, 1], [], []>} : vector<32x384xbf16>, vector<384x256xbf16>, vector<32x256xf32> -> vector<32x256xf32>
    %c0_3 = arith.constant 0 : index
    %c0_4 = arith.constant 0 : index
    %3 = vector.load %arg3[%c0_3, %c0_4] : memref<1x256xf32, #tpu.memory_space<vmem>>, vector<1x256xf32>
    %4 = vector.broadcast %3 : vector<1x256xf32> to vector<32x256xf32>
    %5 = arith.addf %2, %4 : vector<32x256xf32>
    %6 = math.tanh %5 : vector<32x256xf32>
    %7 = arith.truncf %6 : vector<32x256xf32> to vector<32x256xbf16>
    %c0_5 = arith.constant 0 : index
    %c0_6 = arith.constant 0 : index
    %8 = vector.load %arg4[%c0_5, %c0_6] : memref<256x128xbf16, #tpu.memory_space<vmem>>, vector<256x128xbf16>
    %cst_7 = arith.constant dense<0.000000e+00> : vector<32x128xf32>
    %9 = tpu.matmul %7, %8, %cst_7 {dimension_numbers = #tpu.dot_dimension_numbers<[1], [0], [0], [1], [0, 0, 1, 1], [], []>} : vector<32x256xbf16>, vector<256x128xbf16>, vector<32x128xf32> -> vector<32x128xf32>
    %c0_8 = arith.constant 0 : index
    %c0_9 = arith.constant 0 : index
    %10 = vector.load %arg5[%c0_8, %c0_9] : memref<1x128xf32, #tpu.memory_space<vmem>>, vector<1x128xf32>
    %11 = vector.broadcast %10 : vector<1x128xf32> to vector<32x128xf32>
    %12 = arith.addf %9, %11 : vector<32x128xf32>
    %cst_10 = arith.constant dense<0xFF800000> : vector<32xf32>
    %13 = vector.multi_reduction <maximumf>, %12, %cst_10 [1] : vector<32x128xf32> to vector<32xf32>
    %14 = vector.shape_cast %13 : vector<32xf32> to vector<32x1xf32>
    %15 = vector.broadcast %14 : vector<32x1xf32> to vector<32x128xf32>
    %16 = arith.subf %12, %15 : vector<32x128xf32>
    %17 = math.exp %16 : vector<32x128xf32>
    %cst_11 = arith.constant dense<0.000000e+00> : vector<32xf32>
    %18 = vector.multi_reduction <add>, %17, %cst_11 [1] : vector<32x128xf32> to vector<32xf32>
    %19 = vector.shape_cast %18 : vector<32xf32> to vector<32x1xf32>
    %20 = math.log %19 : vector<32x1xf32>
    %21 = vector.broadcast %20 : vector<32x1xf32> to vector<32x128xf32>
    %22 = arith.subf %16, %21 : vector<32x128xf32>
    %c0_12 = arith.constant 0 : index
    %c0_13 = arith.constant 0 : index
    %23 = vector.load %arg6[%c0_12, %c0_13] : memref<32x128xf32, #tpu.memory_space<vmem>>, vector<32x128xf32>
    tpu.vector_store %arg6[%c0_12, %c0_13], %22 {strides = array<i32>} : memref<32x128xf32, #tpu.memory_space<vmem>>, vector<32x128xf32>,
    return
  }
  func.func @transform_0(%arg0: i32) -> (i32, i32) {
    %c0_i32 = arith.constant 0 : i32
    %c0_i32_0 = arith.constant 0 : i32
    return %arg0, %c0_i32 : i32, i32
  }
  func.func @transform_1(%arg0: i32) -> (i32, i32) {
    %c0_i32 = arith.constant 0 : i32
    %c0_i32_0 = arith.constant 0 : i32
    %c0_i32_1 = arith.constant 0 : i32
    return %c0_i32, %c0_i32_0 : i32, i32
  }
  func.func @transform_2(%arg0: i32) -> (i32, i32) {
    %c0_i32 = arith.constant 0 : i32
    %c0_i32_0 = arith.constant 0 : i32
    %c0_i32_1 = arith.constant 0 : i32
    return %c0_i32, %c0_i32_0 : i32, i32
  }
  func.func @transform_3(%arg0: i32) -> (i32, i32) {
    %c0_i32 = arith.constant 0 : i32
    %c0_i32_0 = arith.constant 0 : i32
    %c0_i32_1 = arith.constant 0 : i32
    return %c0_i32, %c0_i32_0 : i32, i32
  }
  func.func @transform_4(%arg0: i32) -> (i32, i32) {
    %c0_i32 = arith.constant 0 : i32
    %c0_i32_0 = arith.constant 0 : i32
    %c0_i32_1 = arith.constant 0 : i32
    return %c0_i32, %c0_i32_0 : i32, i32
  }
  func.func @transform_5(%arg0: i32) -> (i32, i32) {
    %c0_i32 = arith.constant 0 : i32
    %c0_i32_0 = arith.constant 0 : i32
    return %arg0, %c0_i32 : i32, i32
  }
}

</mosaic_0001>

<bundles_post_ra>
// kernel: forward.1
= control target key start
LH: loop header
LB: loop body
LE: loop exit
PB: predicated region body
PF: predicated region fallthrough
CT: control target
= control target key end

     0   :  { %v939_v1 = vmov 0   ;;  %s1200_s1 = inlined_call_operand.vmem [shape: bf16[384,256], index: 1, kind: input, shape index: {}]   ;;  %s1201_s0 = inlined_call_operand.vmem [shape: bf16[32,384], index: 0, kind: input, shape index: {}]   ;;  %s1202_s3 = inlined_call_operand.vmem [shape: bf16[256,128], index: 3, kind: input, shape index: {}]   ;;  %s1203_s2 = inlined_call_operand.vmem [shape: f32[1,256], index: 2, kind: input, shape index: {}]   ;;  %s1204_s4 = inlined_call_operand.vmem [shape: f32[1,128], index: 4, kind: input, shape index: {}]   ;;  %s1205_s5 = inlined_call_operand.vmem [shape: f32[32,128], index: 5, kind: output, shape index: {}]  }
   0x1   :  { %v811_v0 = vld [vmem:[%s1200_s1 + $0x74] ss:$8 sps:$4 sm:$0xff]   ;;  %446 = vmatprep.mubr.bf16.mxu1 %v939_v1  ;;  %v813_v2 = vld [vmem:[%s1200_s1 + $0x70] ss:$8 sps:$4 sm:$0xff]   ;;  %v814_v3 = vld [vmem:[%s1200_s1 + $0x64] ss:$8 sps:$4 sm:$0xff]  }
   0x2   :  { %361 = vmatprep.subr.bf16.mxu0 %v811_v0  ;;  %v816_v4 = vld [vmem:[%s1200_s1 + $0x60] ss:$8 sps:$4 sm:$0xff]   ;;  %v817_v5 = vld [vmem:[%s1200_s1 + $0x54] ss:$8 sps:$4 sm:$0xff]   ;;  %v819_v6 = vld [vmem:[%s1200_s1 + $0x50] ss:$8 sps:$4 sm:$0xff]  }
   0x3   :  { %362 = vmatpush1.bf16.msra.mxu0 %v813_v2  ;;  %v820_v7 = vld [vmem:[%s1200_s1 + $0x44] ss:$8 sps:$4 sm:$0xff]   ;;  %v822_v8 = vld [vmem:[%s1200_s1 + $0x40] ss:$8 sps:$4 sm:$0xff]   ;;  %v834_v9 = vld [vmem:[%s1200_s1 + $0x174] ss:$8 sps:$4 sm:$0xff]  }
   0x4   :  { %363 = vmatprep.subr.bf16.mxu0 %v814_v3  ;;  %v837_v10 = vld [vmem:[%s1200_s1 + $0x170] ss:$8 sps:$4 sm:$0xff]   ;;  %v823_v11 = vld [vmem:[%s1200_s1 + $0x34] ss:$8 sps:$4 sm:$0xff]   ;;  %414 = vmatprep.subr.bf16.mxu1 %v834_v9  ;;  %v840_v12 = vld [vmem:[%s1200_s1 + $0x164] ss:$8 sps:$4 sm:$0xff]  }
   0x5   :  { %415 = vmatpush1.bf16.msra.mxu1 %v837_v10  ;;  %v843_v13 = vld [vmem:[%s1200_s1 + $0x160] ss:$8 sps:$4 sm:$0xff]   ;;  %v825_v14 = vld [vmem:[%s1200_s1 + $0x30] ss:$8 sps:$4 sm:$0xff]   ;;  %v826_v15 = vld [vmem:[%s1200_s1 + $0x24] ss:$8 sps:$4 sm:$0xff]  }
   0x6   :  { %416 = vmatprep.subr.bf16.mxu1 %v840_v12  ;;  %v846_v16 = vld [vmem:[%s1200_s1 + $0x154] ss:$8 sps:$4 sm:$0xff]   ;;  %v849_v17 = vld [vmem:[%s1200_s1 + $0x150] ss:$8 sps:$4 sm:$0xff]   ;;  %v828_v18 = vld [vmem:[%s1200_s1 + $0x20] ss:$8 sps:$4 sm:$0xff]  }
   0x7   :  { %364 = vmatpush1.bf16.msra.mxu0 %v816_v4  ;;  %v852_v19 = vld [vmem:[%s1200_s1 + $0x144] ss:$8 sps:$4 sm:$0xff]   ;;  %v829_v20 = vld [vmem:[%s1200_s1 + $0x14] ss:$8 sps:$4 sm:$0xff]   ;;  %v831_v21 = vld [vmem:[%s1200_s1 + $0x10] ss:$8 sps:$4 sm:$0xff]  }
   0x8   :  { %365 = vmatprep.subr.bf16.mxu0 %v817_v5  ;;  %v855_v22 = vld [vmem:[%s1200_s1 + $0x140] ss:$8 sps:$4 sm:$0xff]   ;;  %v858_v23 = vld [vmem:[%s1200_s1 + $0x134] ss:$8 sps:$4 sm:$0xff]   ;;  %v832_v24 = vld [vmem:[%s1200_s1 + $0x4] ss:$8 sps:$4 sm:$0xff]  }
   0x9   :  { %417 = vmatpush1.bf16.msra.mxu1 %v843_v13  ;;  %v861_v25 = vld [vmem:[%s1200_s1 + $0x130] ss:$8 sps:$4 sm:$0xff]   ;;  %v836_v26 = vld [vmem:[%s1200_s1] ss:$8 sps:$4 sm:$0xff]   ;;  %v864_v27 = vld [vmem:[%s1200_s1 + $0x124] ss:$8 sps:$4 sm:$0xff]  }
   0xa   :  { %418 = vmatprep.subr.bf16.mxu1 %v846_v16  ;;  %v838_v28 = vld [vmem:[%s1200_s1 + $0xf4] ss:$8 sps:$4 sm:$0xff]   ;;  %v842_v29 = vld [vmem:[%s1200_s1 + $0xf0] ss:$8 sps:$4 sm:$0xff]   ;;  %v867_v30 = vld [vmem:[%s1200_s1 + $0x120] ss:$8 sps:$4 sm:$0xff]  }
   0xb   :  { %366 = vmatpush1.bf16.msra.mxu0 %v819_v6  ;;  %v870_v31 = vld [vmem:[%s1200_s1 + $0x114] ss:$8 sps:$4 sm:$0xff]   ;;  %v844_v32 = vld [vmem:[%s1200_s1 + $0xe4] ss:$8 sps:$4 sm:$0xff]   ;;  %v848_v33 = vld [vmem:[%s1200_s1 + $0xe0] ss:$8 sps:$4 sm:$0xff]  }
   0xc   :  { %367 = vmatprep.subr.bf16.mxu0 %v820_v7  ;;  %v873_v34 = vld [vmem:[%s1200_s1 + $0x110] ss:$8 sps:$4 sm:$0xff]   ;;  %v876_v36 = vld [vmem:[%s1200_s1 + $0x104] ss:$8 sps:$4 sm:$0xff]   ;;  %v850_v37 = vld [vmem:[%s1200_s1 + $0xd4] ss:$8 sps:$4 sm:$0xff]  }
   0xd   :  { %419 = vmatpush1.bf16.msra.mxu1 %v849_v17  ;;  %v886_v35 = vld [vmem:[%s1201_s0 + $0x4] ss:$12 sps:$4 sm:$0xff]   ;;  %v879_v38 = vld [vmem:[%s1200_s1 + $0x100] ss:$8 sps:$4 sm:$0xff]   ;;  %v862_v43 = vld [vmem:[%s1200_s1 + $0xb4] ss:$8 sps:$4 sm:$0xff]  }
   0xe   :  { %420 = vmatprep.subr.bf16.mxu1 %v852_v19  ;;  %393 = vmatprep.mubr.bf16.mxu0 %v886_v35  ;;  %v854_v39 = vld [vmem:[%s1200_s1 + $0xd0] ss:$8 sps:$4 sm:$0xff]   ;;  %v856_v40 = vld [vmem:[%s1200_s1 + $0xc4] ss:$8 sps:$4 sm:$0xff]   ;;  %v882_v41 = vld [vmem:[%s1201_s0 + $0x8] ss:$12 sps:$4 sm:$0xff]  }
   0xf   :  { %368 = vmatpush1.bf16.msra.mxu0 %v822_v8  ;;  %v860_v42 = vld [vmem:[%s1200_s1 + $0xc0] ss:$8 sps:$4 sm:$0xff]   ;;  %v866_v44 = vld [vmem:[%s1200_s1 + $0xb0] ss:$8 sps:$4 sm:$0xff]   ;;  %v868_v45 = vld [vmem:[%s1200_s1 + $0xa4] ss:$8 sps:$4 sm:$0xff]   ;;  %v79_v8 = vlaneseq }
  0x10   :  { %369 = vmatprep.subr.bf16.mxu0 %v823_v11  ;;  %v887_v46 = vld [vmem:[%s1201_s0 + $0x20] ss:$12 sps:$4 sm:$0xff]   ;;  %v874_v48 = vld [vmem:[%s1200_s1 + $0x94] ss:$8 sps:$4 sm:$0xff]   ;;  %v878_v49 = vld [vmem:[%s1200_s1 + $0x90] ss:$8 sps:$4 sm:$0xff]  }
  0x11   :  { %421 = vmatpush1.bf16.msra.mxu1 %v855_v22  ;;  %v872_v47 = vld [vmem:[%s1200_s1 + $0xa0] ss:$8 sps:$4 sm:$0xff]   ;;  %v880_v50 = vld [vmem:[%s1200_s1 + $0x84] ss:$8 sps:$4 sm:$0xff]   ;;  %v891_v55 = vld [vmem:[%s1202_s3 + $0x78] sm:$0xff]   ;;  %v80_v10 = vshrl.u32 %v79_v8, 7 }
  0x12   :  { %422 = vmatprep.subr.bf16.mxu1 %v858_v23  ;;  %v883_v51 = vld [vmem:[%s1200_s1 + $0x80] ss:$8 sps:$4 sm:$0xff]   ;;  %v890_v54 = vld [vmem:[%s1201_s0 + $0x18] ss:$12 sps:$4 sm:$0xff]   ;;  %v893_v57 = vld [vmem:[%s1202_s3 + $0x70] sm:$0xff]  }
  0x13   :  { %370 = vmatpush1.bf16.msra.mxu0 %v825_v14  ;;  %v884_v52 = vld [vmem:[%s1201_s0] ss:$12 sps:$4 sm:$0xff]   ;;  %v888_v53 = vld [vmem:[%s1201_s0 + $0x1c] ss:$12 sps:$4 sm:$0xff]   ;;  %v894_v58 = vld [vmem:[%s1202_s3 + $0x30] sm:$0xff]   ;;  %v85_v11 = vsub.s32 1, %v80_v10 }
  0x14   :  { %371 = vmatprep.subr.bf16.mxu0 %v826_v15  ;;  %v892_v56 = vld [vmem:[%s1202_s3 + $0x38] sm:$0xff]   ;;  %v895_v59 = vld [vmem:[%s1202_s3 + $0x68] sm:$0xff]   ;;  %v897_v61 = vld [vmem:[%s1202_s3 + $0x60] sm:$0xff]   ;;  %v81_v12 = vsub.s32 0, %v80_v10 }
  0x15   :  { %423 = vmatpush1.bf16.msra.mxu1 %v861_v25  ;;  %v896_v60 = vld [vmem:[%s1202_s3 + $0x28] sm:$0xff]   ;;  %v898_v62 = vld [vmem:[%s1202_s3 + $0x20] sm:$0xff]   ;;  %v899_v63 = vld [vmem:[%s1202_s3 + $0x58] sm:$0xff]  }
  0x16   :  { %424 = vmatprep.subr.bf16.mxu1 %v864_v27  ;;  %v900_v0 = vld [vmem:[%s1202_s3 + $0x18] sm:$0xff]   ;;  %v902_v2 = vld [vmem:[%s1202_s3 + $0x10] sm:$0xff]   ;;  %v903_v3 = vld [vmem:[%s1202_s3 + $0x48] sm:$0xff]  }
  0x17   :  { %372 = vmatpush1.bf16.msra.mxu0 %v828_v18  ;;  %v904_v4 = vld [vmem:[%s1202_s3 + $0x8] sm:$0xff]   ;;  %v905_v5 = vld [vmem:[%s1202_s3 + $0x40] sm:$0xff]  }
  0x18   :  { %373 = vmatprep.subr.bf16.mxu0 %v829_v20  ;;  %v906_v6 = vld [vmem:[%s1202_s3] sm:$0xff]  }
  0x19   :  { %425 = vmatpush1.bf16.msra.mxu1 %v867_v30  ;;  %v77_v14 = vld [vmem:[%s1203_s2] sm:$0x3] }
  0x1a   :  { %426 = vmatprep.subr.bf16.mxu1 %v870_v31  ;;  %v86_v15 = vrot.slane %v77_v14, %v85_v11  ;;  %v82_v16 = vrot.slane %v77_v14, %v81_v12 }
  0x1b   :  { %374 = vmatpush1.bf16.msra.mxu0 %v831_v21 }
  0x1c   :  { %375 = vmatprep.subr.bf16.mxu0 %v832_v24 }
  0x1d   :  { %427 = vmatpush1.bf16.msra.mxu1 %v873_v34 }
  0x1e   :  { %428 = vmatprep.subr.bf16.mxu1 %v876_v36 }
  0x1f   :  { %376 = vmatpush1.bf16.msra.mxu0 %v836_v26 }
  0x20   :  { %377 = vmatprep.subr.bf16.mxu0 %v838_v28 }
  0x21   :  { %429 = vmatpush1.bf16.msra.mxu1 %v879_v38 }
  0x22   :  { %782 = vmatprep.subr.bf16.mxu1 %v891_v55 }
  0x23   :  { %378 = vmatpush2.bf16.msra.mxu0 %v842_v29 }
  0x24   :  { %379 = vmatprep.subr.bf16.mxu0 %v844_v32  ;;  %447 = vmatmul.mubr.bf16.vlgmr.msra.gmra.mxu1 %v882_v41 }
  0x25   :  { %456 = vmatprep.mubr.bf16.mxu1 %v939_v1  ;;  %783 = vmatpush3.bf16.msra.mxu1 %v892_v56  ;;  %v901_v1 = vld [vmem:[%s1202_s3 + $0x50] sm:$0xff]  }
  0x26   :  { %784 = vmatprep.subr.bf16.mxu1 %v893_v57 }
  0x27   :  { %380 = vmatpush2.bf16.msra.mxu0 %v848_v33 }
  0x28   :  { %381 = vmatprep.subr.bf16.mxu0 %v850_v37 }
  0x29   :  { %785 = vmatpush3.bf16.msra.mxu1 %v894_v58 }
  0x2a   :  { %786 = vmatprep.subr.bf16.mxu1 %v895_v59 }
  0x2b   :  { %382 = vmatpush2.bf16.msra.mxu0 %v854_v39 }
  0x2c   :  { %383 = vmatprep.subr.bf16.mxu0 %v856_v40  ;;  %457 = vmatmul.mubr.bf16.gmra.mxu1 %v887_v46 }
  0x2d   :  { %787 = vmatpush3.bf16.msra.mxu1 %v896_v60  ;;  %v765_v60 = vld [vmem:[%s1204_s4] ss:$0 sm:$0xff] }
  0x2e   :  { %788 = vmatprep.subr.bf16.mxu1 %v897_v61 }
  0x2f   :  { %384 = vmatpush2.bf16.msra.mxu0 %v860_v42 }
  0x30   :  { %385 = vmatprep.subr.bf16.mxu0 %v862_v43 }
  0x31   :  { %789 = vmatpush3.bf16.msra.mxu1 %v898_v62 }
  0x32   :  { %790 = vmatprep.subr.bf16.mxu1 %v899_v63 }
  0x33   :  { %386 = vmatpush2.bf16.msra.mxu0 %v866_v44 }
  0x34   :  { %387 = vmatprep.subr.bf16.mxu0 %v868_v45 }
  0x35   :  { %791 = vmatpush3.bf16.msra.mxu1 %v900_v0 }
  0x36   :  { %792 = vmatprep.subr.bf16.mxu1 %v901_v1 }
  0x37   :  { %388 = vmatpush2.bf16.msra.mxu0 %v872_v47 }
  0x38   :  { %389 = vmatprep.subr.bf16.mxu0 %v874_v48 }
  0x39   :  { %793 = vmatpush3.bf16.msra.mxu1 %v902_v2 }
  0x3a   :  { %794 = vmatprep.subr.bf16.mxu1 %v903_v3 }
  0x3b   :  { %390 = vmatpush2.bf16.msra.mxu0 %v878_v49 }
  0x3c   :  { %391 = vmatprep.subr.bf16.mxu0 %v880_v50 }
  0x3d   :  { %795 = vmatpush3.bf16.msra.mxu1 %v904_v4 }
  0x3e   :  { %796 = vmatprep.subr.bf16.mxu1 %v905_v5 }
  0x3f   :  { %392 = vmatpush2.bf16.msra.mxu0 %v883_v51 }
  0x41   :  { %797 = vmatpush3.bf16.msra.mxu1 %v906_v6 }
  0x42   :  { %394 = vmatmul.mubr.bf16.vlgmr.msra.gmra.mxu0 %v884_v52 }
  0x43   :  { %403 = vmatprep.mubr.bf16.mxu0 %v888_v53 }
  0x4a   :  { %404 = vmatmul.mubr.bf16.gmra.mxu0 %v890_v54 }
  0xe4   :  { %v448_v7 = vpop.f32.mrf.mxu1 }
  0xe6   :  { %v450_v9 = vpop.f32.mrf.mxu1 }
  0xe8   :  { %v452_v13 = vpop.f32.mrf.mxu1 }
  0xea   :  { %v454_v18 = vpop.f32.mrf.mxu1 }
  0xec   :  { %v458_v23 = vpop.f32.mrf.mxu1 }
  0xee   :  { %v460_v30 = vpop.f32.mrf.mxu1 }
  0xf0   :  { %v462_v36 = vpop.f32.mrf.mxu1 }
  0xf2   :  { %v464_v44 = vpop.f32.mrf.mxu1 }
 0x102   :  { %v395_v17 = vpop.f32.mrf.mxu0 }
 0x103   :  { %v396_v21 = vadd.f32 %v395_v17, %v82_v16 }
 0x104   :  { %v397_v19 = vpop.f32.mrf.mxu0 }
 0x105   :  { %v398_v20 = vadd.f32 %v397_v19, %v86_v15  ;;  %v449_v29 = vadd.f32 %v448_v7, %v396_v21 }
 0x106   :  { %v399_v22 = vpop.f32.mrf.mxu0 }
 0x107   :  { %v451_v24 = vadd.f32 %v450_v9, %v398_v20  ;;  %v400_v25 = vadd.f32 %v399_v22, %v82_v16 }
 0x108   :  { %v401_v26 = vpop.f32.mrf.mxu0 }
 0x109   :  { %v453_v27 = vadd.f32 %v452_v13, %v400_v25  ;;  %v402_v28 = vadd.f32 %v401_v26, %v86_v15  ;;  %907 = vtanh.f32 %v451_v24 }
 0x10a   :  { %v405_v31 = vpop.f32.mrf.mxu0 }
 0x10b   :  { %v455_v32 = vadd.f32 %v454_v18, %v402_v28  ;;  %909 = vtanh.f32 %v453_v27  ;;  %v406_v35 = vadd.f32 %v405_v31, %v82_v16 }
 0x10c   :  { %v407_v33 = vpop.f32.mrf.mxu0 }
 0x10d   :  { %911 = vtanh.f32 %v455_v32  ;;  %v408_v34 = vadd.f32 %v407_v33, %v86_v15  ;;  %v459_v43 = vadd.f32 %v458_v23, %v406_v35 }
 0x10e   :  { %913 = vtanh.f32 %v449_v29  ;;  %v409_v37 = vpop.f32.mrf.mxu0 }
 0x10f   :  { %v461_v38 = vadd.f32 %v460_v30, %v408_v34  ;;  %v410_v39 = vadd.f32 %v409_v37, %v82_v16 }
 0x110   :  { %v411_v40 = vpop.f32.mrf.mxu0 }
 0x111   :  { %v463_v41 = vadd.f32 %v462_v36, %v410_v39  ;;  %v412_v42 = vadd.f32 %v411_v40, %v86_v15  ;;  %915 = vtanh.f32 %v461_v38 }
 0x113   :  { %v465_v45 = vadd.f32 %v464_v44, %v412_v42  ;;  %917 = vtanh.f32 %v463_v41 }
 0x115   :  { %919 = vtanh.f32 %v465_v45 }
 0x116   :  { %921 = vtanh.f32 %v459_v43  ;;  %v908_v46 = vpop.eup %907 }
 0x118   :  { %v910_v47 = vpop.eup %909 }
 0x11a   :  { %v912_v48 = vpop.eup %911 }
 0x11b   :  { %v914_v49 = vpop.eup %913  ;;  %v476_v50 = vpack.c.bf16 %v912_v48, %v908_v46 }
 0x11c   :  { %v475_v51 = vpack.c.bf16 %v910_v47, %v914_v49 }
 0x11d   :  { %646 = vmatprep.mubr.bf16.mxu1 %v476_v50 }
 0x11e   :  { %647 = vmatmul.mubr.bf16.vlgmr.msra.gmra.mxu1 %v475_v51  ;;  %v916_v52 = vpop.eup %915 }
 0x120   :  { %v918_v53 = vpop.eup %917 }
 0x122   :  { %v920_v54 = vpop.eup %919 }
 0x123   :  { %v922_v55 = vpop.eup %921  ;;  %v478_v56 = vpack.c.bf16 %v920_v54, %v916_v52 }
 0x124   :  { %v477_v57 = vpack.c.bf16 %v918_v53, %v922_v55 }
 0x125   :  { %654 = vmatprep.mubr.bf16.mxu1 %v478_v56 }
 0x126   :  { %655 = vmatmul.mubr.bf16.gmra.mxu1 %v477_v57 }
 0x1de   :  { %v798_v58 = vpop.f32.mrf.mxu1 }
 0x1e0   :  { %v799_v59 = vpop.f32.mrf.mxu1 }
 0x1e1   :  { %v800_v61 = vadd.f32 %v799_v59, %v798_v58 }
 0x1e2   :  { %v801_v62 = vpop.f32.mrf.mxu1 }
 0x1e3   :  { %v649_v63 = vadd.f32 %v800_v61, %v765_v60 }
 0x1e4   :  { %v802_v0 = vpop.f32.mrf.mxu1 }
 0x1e5   :  { %v803_v1 = vadd.f32 %v802_v0, %v801_v62  ;;  %663 = vmax.xlane.f32.xlu0 %v649_v63 }
 0x1e6   :  { %v804_v2 = vpop.f32.mrf.mxu1 }
 0x1e7   :  { %v652_v3 = vadd.f32 %v803_v1, %v765_v60 }
 0x1e8   :  { %v805_v4 = vpop.f32.mrf.mxu1 }
 0x1e9   :  { %v806_v5 = vadd.f32 %v805_v4, %v804_v2  ;;  %665 = vmax.xlane.f32.xlu0 %v652_v3 }
 0x1ea   :  { %v807_v6 = vpop.f32.mrf.mxu1 }
 0x1eb   :  { %v657_v7 = vadd.f32 %v806_v5, %v765_v60 }
 0x1ec   :  { %v808_v8 = vpop.f32.mrf.mxu1 }
 0x1ed   :  { %v809_v9 = vadd.f32 %v808_v8, %v807_v6  ;;  %667 = vmax.xlane.f32.xlu1 %v657_v7 }
 0x1ef   :  { %v660_v10 = vadd.f32 %v809_v9, %v765_v60 }
 0x1f1   :  { %669 = vmax.xlane.f32.xlu1 %v660_v10 }
 0x26e   :  { %v664_v11 = vpop.xlane.xlu0 %663 }
 0x26f   :  { %v671_v12 = vsub.f32 %v649_v63, %v664_v11 }
 0x271   :  { %v675_v13 = vmul.f32 1.442695, %v671_v12 }
 0x272   :  { %v666_v14 = vpop.xlane.xlu0 %665 }
 0x273   :  { %923 = vpow2.f32 %v675_v13  ;;  %v672_v15 = vsub.f32 %v652_v3, %v666_v14 }
 0x275   :  { %v677_v16 = vmul.f32 1.442695, %v672_v15 }
 0x276   :  { %v668_v17 = vpop.xlane.xlu1 %667 }
 0x277   :  { %925 = vpow2.f32 %v677_v16  ;;  %v673_v18 = vsub.f32 %v657_v7, %v668_v17 }
 0x279   :  { %v679_v19 = vmul.f32 1.442695, %v673_v18 }
 0x27a   :  { %v670_v20 = vpop.xlane.xlu1 %669 }
 0x27b   :  { %927 = vpow2.f32 %v679_v19  ;;  %v674_v21 = vsub.f32 %v660_v10, %v670_v20 }
 0x27d   :  { %v681_v22 = vmul.f32 1.442695, %v674_v21 }
 0x27f   :  { %929 = vpow2.f32 %v681_v22 }
 0x280   :  { %v924_v23 = vpop.eup %923 }
 0x281   :  { %683 = vadd.xlane.f32.xlu0 %v924_v23 }
 0x284   :  { %v926_v24 = vpop.eup %925 }
 0x285   :  { %685 = vadd.xlane.f32.xlu1 %v926_v24 }
 0x288   :  { %v928_v25 = vpop.eup %927 }
 0x289   :  { %687 = vadd.xlane.f32.xlu0 %v928_v25 }
 0x28c   :  { %v930_v26 = vpop.eup %929 }
 0x28d   :  { %689 = vadd.xlane.f32.xlu1 %v930_v26 }
 0x30a   :  { %v684_v27 = vpop.xlane.xlu0 %683 }
 0x30b   :  { %931 = vlog2.f32 %v684_v27 }
 0x30e   :  { %v686_v28 = vpop.xlane.xlu1 %685 }
 0x30f   :  { %933 = vlog2.f32 %v686_v28 }
 0x312   :  { %v688_v29 = vpop.xlane.xlu0 %687 }
 0x313   :  { %935 = vlog2.f32 %v688_v29 }
 0x316   :  { %v690_v30 = vpop.xlane.xlu1 %689 }
 0x317   :  { %937 = vlog2.f32 %v690_v30 }
 0x318   :  { %v932_v31 = vpop.eup %931 }
 0x319   :  { %v692_v32 = vmul.f32 0.6931472, %v932_v31 }
 0x31b   :  { %v699_v33 = vsub.f32 %v671_v12, %v692_v32 }
 0x31c   :  { %v934_v34 = vpop.eup %933 }
 0x31d   :  { %703 = vst [vmem:[%s1205_s5] sm:$0xff] %v699_v33  ;;  %v694_v35 = vmul.f32 0.6931472, %v934_v34 }
 0x31f   :  { %v700_v36 = vsub.f32 %v672_v15, %v694_v35 }
 0x320   :  { %v936_v37 = vpop.eup %935 }
 0x321   :  { %704 = vst [vmem:[%s1205_s5 + $0x8] sm:$0xff] %v700_v36  ;;  %v696_v38 = vmul.f32 0.6931472, %v936_v37 }
 0x323   :  { %v701_v39 = vsub.f32 %v673_v18, %v696_v38 }
 0x324   :  { %v938_v40 = vpop.eup %937 }
 0x325   :  { %705 = vst [vmem:[%s1205_s5 + $0x10] sm:$0xff] %v701_v39  ;;  %v698_v41 = vmul.f32 0.6931472, %v938_v40 }
 0x327   :  { %v702_v42 = vsub.f32 %v674_v21, %v698_v41 }
 0x329   :  { %706 = vst [vmem:[%s1205_s5 + $0x18] sm:$0xff] %v702_v42 }

</bundles_post_ra>
